<compile_context>
chip_gen: v5e
topology: v5e:2x2
jax: 0.10.0
libtpu: 0.0.40
codegen_flags: <defaults>
</compile_context>

<pallas_src>
import functools

import jax
import jax.numpy as jnp
from jax.experimental import pallas as pl
from jax.experimental.pallas import tpu as pltpu


# ---------------------------------------------------------------------------
# Stage 1: K / V projections, head-major output layout.
# ---------------------------------------------------------------------------
def _kv_projection_kernel(xkv_ref, wk_ref, wv_ref, k_out_ref, v_out_ref, *,
                          num_heads, head_dim):
    """grid = (batch, seq_tile).  One fused matmul per projection per tile;
    the head split (lane slices) happens once per kv element, amortized."""
    x = xkv_ref[0]                                            # (ts, kv_dim)
    k = jnp.dot(x, wk_ref[...],
                preferred_element_type=jnp.float32).astype(k_out_ref.dtype)
    v = jnp.dot(x, wv_ref[...],
                preferred_element_type=jnp.float32).astype(v_out_ref.dtype)
    for h in range(num_heads):
        lo = h * head_dim
        k_out_ref[0, h] = k[:, lo:lo + head_dim]
        v_out_ref[0, h] = v[:, lo:lo + head_dim]


# ---------------------------------------------------------------------------
# Stage 2: flash attention with fused Q projection and fused output projection.
# ---------------------------------------------------------------------------
def _flash_attention_kernel(x_ref, k_ref, v_ref, wq_ref, wo_ref,
                            out_ref,
                            q_sc, acc_sc, m_sc, l_sc,
                            *, num_heads, head_dim, scale):
    """grid = (batch, q_tile, kv_tile); kv_tile is the reduction axis."""
    ki = pl.program_id(2)
    n_kv = pl.num_programs(2)
    cdtype = q_sc.dtype            # MXU operand dtype == input dtype (bf16)

    @pl.when(ki == 0)
    def _init():
        # Fused Q projection for this q-tile (bf16 operands, f32 accumulation);
        # softmax scale folded in; stored head-major (once per q-tile).
        q = jnp.dot(x_ref[0], wq_ref[...],
                    preferred_element_type=jnp.float32) * scale
        q = q.astype(cdtype)                                   # (tq, H*D)
        for h in range(num_heads):
            q_sc[h] = q[:, h * head_dim:(h + 1) * head_dim]
        acc_sc[...] = jnp.zeros(acc_sc.shape, acc_sc.dtype)
        m_sc[...] = jnp.full(m_sc.shape, -jnp.inf, m_sc.dtype)
        l_sc[...] = jnp.zeros(l_sc.shape, l_sc.dtype)

    q = q_sc[...]                                              # (H, tq,  D)
    k = k_ref[0]                                               # (H, tkv, D)
    v = v_ref[0]                                               # (H, tkv, D)

    # Batched-over-heads QK^T: (H, tq, tkv) in f32.
    s = jax.lax.dot_general(q, k, (((2,), (2,)), ((0,), (0,))),
                            preferred_element_type=jnp.float32)

    m_prev = m_sc[...]                                         # (H, tq, 1)
    m_new = jnp.maximum(m_prev, jnp.max(s, axis=-1, keepdims=True))
    alpha = jnp.exp(m_prev - m_new)
    p = jnp.exp(s - m_new)                                     # unnormalized
    l_sc[...] = alpha * l_sc[...] + jnp.sum(p, axis=-1, keepdims=True)
    m_sc[...] = m_new

    # Batched-over-heads PV: (H, tq, D) f32 accumulation.
    pv = jax.lax.dot_general(p.astype(cdtype), v,
                             (((2,), (1,)), ((0,), (0,))),
                             preferred_element_type=jnp.float32)
    acc_sc[...] = alpha * acc_sc[...] + pv

    @pl.when(ki == n_kv - 1)
    def _finalize():
        # Deferred normalization (EUP approx reciprocal), assemble one
        # lane-contiguous (tq, H*D) tile, then a SINGLE fused output
        # projection with contraction K = H*D and a lane-dense store.
        inv_l = pl.reciprocal(l_sc[...], approx=True)          # (H, tq, 1)
        o_hm = (acc_sc[...] * inv_l).astype(cdtype)            # (H, tq, D)
        o = jnp.concatenate([o_hm[h] for h in range(num_heads)], axis=-1)
        out = jnp.dot(o, wo_ref[...], preferred_element_type=jnp.float32)
        out_ref[0] = out.astype(out_ref.dtype)


def _pick_tile(seq_len, preferred):
    """Largest divisor of seq_len that is <= preferred, preferring multiples
    of 16 (bf16 sublane packing), then multiples of 8, else the full extent."""
    hi = max(1, min(preferred, seq_len))
    for t in range(hi, 0, -1):
        if seq_len % t == 0 and t % 16 == 0:
            return t
    for t in range(hi, 0, -1):
        if seq_len % t == 0 and t % 8 == 0:
            return t
    return seq_len


def attention_forward(hidden_states, wq, wk, wv, wo, *, num_heads, head_dim,
                      encoder_hidden_states=None, scale=None,
                      tile_q=512, tile_kv=512, tile_proj=512,
                      vmem_limit_bytes=64 * 1024 * 1024):
    """Equivalent of Attention.forward (sdpa path, no biases).

    hidden_states: (B, S_q, q_dim); encoder_hidden_states: (B, S_kv, kv_dim)
    weights stored (in_features, out_features).
    """
    if encoder_hidden_states is None:
        encoder_hidden_states = hidden_states           # self-attention
    if scale is None:
        scale = 1.0 / float(head_dim) ** 0.5

    B, S_q, q_dim = hidden_states.shape
    _, S_kv, kv_dim = encoder_hidden_states.shape
    dim_inner = num_heads * head_dim
    assert wq.shape == (q_dim, dim_inner)
    assert wk.shape == (kv_dim, dim_inner)
    assert wv.shape == (kv_dim, dim_inner)
    assert wo.shape == (dim_inner, q_dim)

    dtype = hidden_states.dtype
    ts = _pick_tile(S_kv, tile_proj)
    tq = _pick_tile(S_q, tile_q)
    tkv = _pick_tile(S_kv, tile_kv)

    # --------------------------- Stage 1: K / V ----------------------------
    kv_kernel = functools.partial(_kv_projection_kernel,
                                  num_heads=num_heads, head_dim=head_dim)
    k_proj, v_proj = pl.pallas_call(
        kv_kernel,
        out_shape=(
            jax.ShapeDtypeStruct((B, num_heads, S_kv, head_dim), dtype),
            jax.ShapeDtypeStruct((B, num_heads, S_kv, head_dim), dtype),
        ),
        grid_spec=pltpu.PrefetchScalarGridSpec(
            num_scalar_prefetch=0,
            grid=(B, S_kv // ts),
            in_specs=[
                pl.BlockSpec((1, ts, kv_dim), lambda b, si: (b, si, 0)),
                pl.BlockSpec((kv_dim, dim_inner), lambda b, si: (0, 0)),
                pl.BlockSpec((kv_dim, dim_inner), lambda b, si: (0, 0)),
            ],
            out_specs=[
                pl.BlockSpec((1, num_heads, ts, head_dim),
                             lambda b, si: (b, 0, si, 0)),
                pl.BlockSpec((1, num_heads, ts, head_dim),
                             lambda b, si: (b, 0, si, 0)),
            ],
        ),
        compiler_params=pltpu.CompilerParams(
            dimension_semantics=("parallel", "parallel"),
            vmem_limit_bytes=vmem_limit_bytes),
    )(encoder_hidden_states, wk, wv)

    # ------------------------ Stage 2: flash attention ---------------------
    flash = functools.partial(_flash_attention_kernel,
                              num_heads=num_heads, head_dim=head_dim,
                              scale=scale)
    grid = (B, S_q // tq, S_kv // tkv)

    return pl.pallas_call(
        flash,
        out_shape=jax.ShapeDtypeStruct((B, S_q, q_dim), dtype),
        grid_spec=pltpu.PrefetchScalarGridSpec(
            num_scalar_prefetch=0,
            grid=grid,
            in_specs=[
                pl.BlockSpec((1, tq, q_dim), lambda b, qi, ki: (b, qi, 0)),
                pl.BlockSpec((1, num_heads, tkv, head_dim),
                             lambda b, qi, ki: (b, 0, ki, 0)),
                pl.BlockSpec((1, num_heads, tkv, head_dim),
                             lambda b, qi, ki: (b, 0, ki, 0)),
                pl.BlockSpec((q_dim, dim_inner), lambda b, qi, ki: (0, 0)),
                pl.BlockSpec((dim_inner, q_dim), lambda b, qi, ki: (0, 0)),
            ],
            out_specs=pl.BlockSpec((1, tq, q_dim),
                                   lambda b, qi, ki: (b, qi, 0)),
            scratch_shapes=[
                pltpu.VMEM((num_heads, tq, head_dim), dtype),         # Q (scaled)
                pltpu.VMEM((num_heads, tq, head_dim), jnp.float32),   # accumulator
                pltpu.VMEM((num_heads, tq, 1), jnp.float32),          # running max
                pltpu.VMEM((num_heads, tq, 1), jnp.float32),          # running sum
            ],
        ),
        compiler_params=pltpu.CompilerParams(
            dimension_semantics=("parallel", "parallel", "arbitrary"),
            vmem_limit_bytes=vmem_limit_bytes),
    )(hidden_states, k_proj, v_proj, wq, wo)


# ---------------------------------------------------------------------------
# Pure-JAX reference mirroring Attention.sdpa_attn with half-precision linears.
# ---------------------------------------------------------------------------
def _reference(hidden_states, encoder_hidden_states, wq, wk, wv, wo, *,
               num_heads, head_dim, scale=None):
    if scale is None:
        scale = 1.0 / float(head_dim) ** 0.5
    dtype = hidden_states.dtype
    f32 = jnp.float32
    B, Sq, _ = hidden_states.shape
    Skv = encoder_hidden_states.shape[1]

    q = jnp.dot(hidden_states.astype(f32), wq.astype(f32)).astype(dtype)
    k = jnp.dot(encoder_hidden_states.astype(f32), wk.astype(f32)).astype(dtype)
    v = jnp.dot(encoder_hidden_states.astype(f32), wv.astype(f32)).astype(dtype)

    q = q.reshape(B, Sq, num_heads, head_dim).transpose(0, 2, 1, 3).astype(f32)
    k = k.reshape(B, Skv, num_heads, head_dim).transpose(0, 2, 1, 3).astype(f32)
    v = v.reshape(B, Skv, num_heads, head_dim).transpose(0, 2, 1, 3).astype(f32)

    s = jnp.einsum('bnqd,bnkd->bnqk', q, k) * scale
    p = jax.nn.softmax(s, axis=-1)
    o = jnp.einsum('bnqk,bnkd->bnqd', p, v)
    o = o.transpose(0, 2, 1, 3).reshape(B, Sq, num_heads * head_dim).astype(dtype)
    out = jnp.dot(o.astype(f32), wo.astype(f32))
    return out.astype(dtype)


if __name__ == "__main__":
    # Module config: q_dim=32, num_heads=4, head_dim=8 (dim_inner=32), no
    # biases, scale=None -> 1/sqrt(head_dim), sdpa path, self-attention.
    # torch.float16 default is mapped to bfloat16 on TPU.
    B, S = 2, 32
    q_dim, num_heads, head_dim = 32, 4, 8
    dim_inner = num_heads * head_dim
    dtype = jnp.bfloat16

    key = jax.random.PRNGKey(0)
    kx, kq, kk, kv_, ko = jax.random.split(key, 5)
    x = jax.random.normal(kx, (B, S, q_dim), dtype=jnp.float32).astype(dtype)
    wq = (jax.random.normal(kq, (q_dim, dim_inner)) * (q_dim ** -0.5)).astype(dtype)
    wk = (jax.random.normal(kk, (q_dim, dim_inner)) * (q_dim ** -0.5)).astype(dtype)
    wv = (jax.random.normal(kv_, (q_dim, dim_inner)) * (q_dim ** -0.5)).astype(dtype)
    wo = (jax.random.normal(ko, (dim_inner, q_dim)) * (dim_inner ** -0.5)).astype(dtype)

    # Small tiles so the run exercises the multi-step online-softmax reduction
    # (flash grid = (2, 2, 4)); real workloads would use the larger defaults.
    out = attention_forward(x, wq, wk, wv, wo, num_heads=num_heads,
                            head_dim=head_dim, tile_q=16, tile_kv=8)
    out = jax.block_until_ready(out)

    ref = _reference(x, x, wq, wk, wv, wo, num_heads=num_heads,
                     head_dim=head_dim)
    err = jnp.max(jnp.abs(out.astype(jnp.float32) - ref.astype(jnp.float32)))
    assert out.shape == (B, S, q_dim) and out.dtype == dtype
    assert float(err) < 5e-2, f"max abs error {float(err)}"
    print("KERNEL_OK")
</pallas_src>

<mosaic_0001>
module attributes {stable_mosaic.version = 11 : i64} {
  func.func @_kv_projection_kernel(%arg0: i32, %arg1: i32, %arg2: memref<1x32x32xbf16, #tpu.memory_space<vmem>>, %arg3: memref<32x32xbf16, #tpu.memory_space<vmem>>, %arg4: memref<32x32xbf16, #tpu.memory_space<vmem>>, %arg5: memref<1x4x32x8xbf16, #tpu.memory_space<vmem>>, %arg6: memref<1x4x32x8xbf16, #tpu.memory_space<vmem>>) attributes {dimension_semantics = [#tpu.dimension_semantics<parallel>, #tpu.dimension_semantics<parallel>], iteration_bounds = array<i64: 2, 1>, scalar_prefetch = 0 : i64, scratch_operands = 0 : i64, tpu.core_type = #tpu.core_type<tc>, window_params = [{transform_indices = @transform_0, window_bounds = array<i64: 1, 32, 32>}, {pipeline_mode = #tpu.pipeline_mode<synchronous>, transform_indices = @transform_1, window_bounds = array<i64: 32, 32>}, {pipeline_mode = #tpu.pipeline_mode<synchronous>, transform_indices = @transform_2, window_bounds = array<i64: 32, 32>}, {transform_indices = @transform_3, window_bounds = array<i64: 1, 4, 32, 8>}, {transform_indices = @transform_4, window_bounds = array<i64: 1, 4, 32, 8>}]} {
    %c0 = arith.constant 0 : index
    %c0_0 = arith.constant 0 : index
    %c0_1 = arith.constant 0 : index
    %0 = vector.load %arg2[%c0, %c0_0, %c0_1] : memref<1x32x32xbf16, #tpu.memory_space<vmem>>, vector<1x32x32xbf16>
    %1 = vector.shape_cast %0 : vector<1x32x32xbf16> to vector<32x32xbf16>
    %c0_2 = arith.constant 0 : index
    %c0_3 = arith.constant 0 : index
    %2 = vector.load %arg3[%c0_2, %c0_3] : memref<32x32xbf16, #tpu.memory_space<vmem>>, vector<32x32xbf16>
    %cst = arith.constant dense<0.000000e+00> : vector<32x32xf32>
    %3 = tpu.matmul %1, %2, %cst {dimension_numbers = #tpu.dot_dimension_numbers<[1], [0], [0], [1], [0, 0, 1, 1], [], []>} : vector<32x32xbf16>, vector<32x32xbf16>, vector<32x32xf32> -> vector<32x32xf32>
    %4 = arith.truncf %3 : vector<32x32xf32> to vector<32x32xbf16>
    %c0_4 = arith.constant 0 : index
    %c0_5 = arith.constant 0 : index
    %5 = vector.load %arg4[%c0_4, %c0_5] : memref<32x32xbf16, #tpu.memory_space<vmem>>, vector<32x32xbf16>
    %cst_6 = arith.constant dense<0.000000e+00> : vector<32x32xf32>
    %6 = tpu.matmul %1, %5, %cst_6 {dimension_numbers = #tpu.dot_dimension_numbers<[1], [0], [0], [1], [0, 0, 1, 1], [], []>} : vector<32x32xbf16>, vector<32x32xbf16>, vector<32x32xf32> -> vector<32x32xf32>
    %7 = arith.truncf %6 : vector<32x32xf32> to vector<32x32xbf16>
    %8 = vector.extract_strided_slice %4 {offsets = [0, 0], sizes = [32, 8], strides = [1, 1]} : vector<32x32xbf16> to vector<32x8xbf16>
    %c0_7 = arith.constant 0 : index
    %c0_8 = arith.constant 0 : index
    %c0_9 = arith.constant 0 : index
    %c0_10 = arith.constant 0 : index
    %9 = vector.load %arg5[%c0_7, %c0_8, %c0_9, %c0_10] : memref<1x4x32x8xbf16, #tpu.memory_space<vmem>>, vector<1x1x32x8xbf16>
    %10 = vector.shape_cast %9 : vector<1x1x32x8xbf16> to vector<32x8xbf16>
    %11 = vector.shape_cast %8 : vector<32x8xbf16> to vector<1x1x32x8xbf16>
    tpu.vector_store %arg5[%c0_7, %c0_8, %c0_9, %c0_10], %11 {strides = array<i32>} : memref<1x4x32x8xbf16, #tpu.memory_space<vmem>>, vector<1x1x32x8xbf16>,
    %12 = vector.extract_strided_slice %7 {offsets = [0, 0], sizes = [32, 8], strides = [1, 1]} : vector<32x32xbf16> to vector<32x8xbf16>
    %c0_11 = arith.constant 0 : index
    %c0_12 = arith.constant 0 : index
    %c0_13 = arith.constant 0 : index
    %c0_14 = arith.constant 0 : index
    %13 = vector.load %arg6[%c0_11, %c0_12, %c0_13, %c0_14] : memref<1x4x32x8xbf16, #tpu.memory_space<vmem>>, vector<1x1x32x8xbf16>
    %14 = vector.shape_cast %13 : vector<1x1x32x8xbf16> to vector<32x8xbf16>
    %15 = vector.shape_cast %12 : vector<32x8xbf16> to vector<1x1x32x8xbf16>
    tpu.vector_store %arg6[%c0_11, %c0_12, %c0_13, %c0_14], %15 {strides = array<i32>} : memref<1x4x32x8xbf16, #tpu.memory_space<vmem>>, vector<1x1x32x8xbf16>,
    %16 = vector.extract_strided_slice %4 {offsets = [0, 8], sizes = [32, 8], strides = [1, 1]} : vector<32x32xbf16> to vector<32x8xbf16>
    %c0_15 = arith.constant 0 : index
    %c1 = arith.constant 1 : index
    %c0_16 = arith.constant 0 : index
    %c0_17 = arith.constant 0 : index
    %17 = vector.load %arg5[%c0_15, %c1, %c0_16, %c0_17] : memref<1x4x32x8xbf16, #tpu.memory_space<vmem>>, vector<1x1x32x8xbf16>
    %18 = vector.shape_cast %17 : vector<1x1x32x8xbf16> to vector<32x8xbf16>
    %19 = vector.shape_cast %16 : vector<32x8xbf16> to vector<1x1x32x8xbf16>
    tpu.vector_store %arg5[%c0_15, %c1, %c0_16, %c0_17], %19 {strides = array<i32>} : memref<1x4x32x8xbf16, #tpu.memory_space<vmem>>, vector<1x1x32x8xbf16>,
    %20 = vector.extract_strided_slice %7 {offsets = [0, 8], sizes = [32, 8], strides = [1, 1]} : vector<32x32xbf16> to vector<32x8xbf16>
    %c0_18 = arith.constant 0 : index
    %c1_19 = arith.constant 1 : index
    %c0_20 = arith.constant 0 : index
    %c0_21 = arith.constant 0 : index
    %21 = vector.load %arg6[%c0_18, %c1_19, %c0_20, %c0_21] : memref<1x4x32x8xbf16, #tpu.memory_space<vmem>>, vector<1x1x32x8xbf16>
    %22 = vector.shape_cast %21 : vector<1x1x32x8xbf16> to vector<32x8xbf16>
    %23 = vector.shape_cast %20 : vector<32x8xbf16> to vector<1x1x32x8xbf16>
    tpu.vector_store %arg6[%c0_18, %c1_19, %c0_20, %c0_21], %23 {strides = array<i32>} : memref<1x4x32x8xbf16, #tpu.memory_space<vmem>>, vector<1x1x32x8xbf16>,
    %24 = vector.extract_strided_slice %4 {offsets = [0, 16], sizes = [32, 8], strides = [1, 1]} : vector<32x32xbf16> to vector<32x8xbf16>
    %c0_22 = arith.constant 0 : index
    %c2 = arith.constant 2 : index
    %c0_23 = arith.constant 0 : index
    %c0_24 = arith.constant 0 : index
    %25 = vector.load %arg5[%c0_22, %c2, %c0_23, %c0_24] : memref<1x4x32x8xbf16, #tpu.memory_space<vmem>>, vector<1x1x32x8xbf16>
    %26 = vector.shape_cast %25 : vector<1x1x32x8xbf16> to vector<32x8xbf16>
    %27 = vector.shape_cast %24 : vector<32x8xbf16> to vector<1x1x32x8xbf16>
    tpu.vector_store %arg5[%c0_22, %c2, %c0_23, %c0_24], %27 {strides = array<i32>} : memref<1x4x32x8xbf16, #tpu.memory_space<vmem>>, vector<1x1x32x8xbf16>,
    %28 = vector.extract_strided_slice %7 {offsets = [0, 16], sizes = [32, 8], strides = [1, 1]} : vector<32x32xbf16> to vector<32x8xbf16>
    %c0_25 = arith.constant 0 : index
    %c2_26 = arith.constant 2 : index
    %c0_27 = arith.constant 0 : index
    %c0_28 = arith.constant 0 : index
    %29 = vector.load %arg6[%c0_25, %c2_26, %c0_27, %c0_28] : memref<1x4x32x8xbf16, #tpu.memory_space<vmem>>, vector<1x1x32x8xbf16>
    %30 = vector.shape_cast %29 : vector<1x1x32x8xbf16> to vector<32x8xbf16>
    %31 = vector.shape_cast %28 : vector<32x8xbf16> to vector<1x1x32x8xbf16>
    tpu.vector_store %arg6[%c0_25, %c2_26, %c0_27, %c0_28], %31 {strides = array<i32>} : memref<1x4x32x8xbf16, #tpu.memory_space<vmem>>, vector<1x1x32x8xbf16>,
    %32 = vector.extract_strided_slice %4 {offsets = [0, 24], sizes = [32, 8], strides = [1, 1]} : vector<32x32xbf16> to vector<32x8xbf16>
    %c0_29 = arith.constant 0 : index
    %c3 = arith.constant 3 : index
    %c0_30 = arith.constant 0 : index
    %c0_31 = arith.constant 0 : index
    %33 = vector.load %arg5[%c0_29, %c3, %c0_30, %c0_31] : memref<1x4x32x8xbf16, #tpu.memory_space<vmem>>, vector<1x1x32x8xbf16>
    %34 = vector.shape_cast %33 : vector<1x1x32x8xbf16> to vector<32x8xbf16>
    %35 = vector.shape_cast %32 : vector<32x8xbf16> to vector<1x1x32x8xbf16>
    tpu.vector_store %arg5[%c0_29, %c3, %c0_30, %c0_31], %35 {strides = array<i32>} : memref<1x4x32x8xbf16, #tpu.memory_space<vmem>>, vector<1x1x32x8xbf16>,
    %36 = vector.extract_strided_slice %7 {offsets = [0, 24], sizes = [32, 8], strides = [1, 1]} : vector<32x32xbf16> to vector<32x8xbf16>
    %c0_32 = arith.constant 0 : index
    %c3_33 = arith.constant 3 : index
    %c0_34 = arith.constant 0 : index
    %c0_35 = arith.constant 0 : index
    %37 = vector.load %arg6[%c0_32, %c3_33, %c0_34, %c0_35] : memref<1x4x32x8xbf16, #tpu.memory_space<vmem>>, vector<1x1x32x8xbf16>
    %38 = vector.shape_cast %37 : vector<1x1x32x8xbf16> to vector<32x8xbf16>
    %39 = vector.shape_cast %36 : vector<32x8xbf16> to vector<1x1x32x8xbf16>
    tpu.vector_store %arg6[%c0_32, %c3_33, %c0_34, %c0_35], %39 {strides = array<i32>} : memref<1x4x32x8xbf16, #tpu.memory_space<vmem>>, vector<1x1x32x8xbf16>,
    return
  }
  func.func @transform_0(%arg0: i32, %arg1: i32) -> (i32, i32, i32) {
    %c0_i32 = arith.constant 0 : i32
    %c0_i32_0 = arith.constant 0 : i32
    return %arg0, %arg1, %c0_i32 : i32, i32, i32
  }
  func.func @transform_1(%arg0: i32, %arg1: i32) -> (i32, i32) {
    %c0_i32 = arith.constant 0 : i32
    %c0_i32_0 = arith.constant 0 : i32
    %c0_i32_1 = arith.constant 0 : i32
    return %c0_i32, %c0_i32_0 : i32, i32
  }
  func.func @transform_2(%arg0: i32, %arg1: i32) -> (i32, i32) {
    %c0_i32 = arith.constant 0 : i32
    %c0_i32_0 = arith.constant 0 : i32
    %c0_i32_1 = arith.constant 0 : i32
    return %c0_i32, %c0_i32_0 : i32, i32
  }
  func.func @transform_3(%arg0: i32, %arg1: i32) -> (i32, i32, i32, i32) {
    %c0_i32 = arith.constant 0 : i32
    %c0_i32_0 = arith.constant 0 : i32
    %c0_i32_1 = arith.constant 0 : i32
    return %arg0, %c0_i32, %arg1, %c0_i32_0 : i32, i32, i32, i32
  }
  func.func @transform_4(%arg0: i32, %arg1: i32) -> (i32, i32, i32, i32) {
    %c0_i32 = arith.constant 0 : i32
    %c0_i32_0 = arith.constant 0 : i32
    %c0_i32_1 = arith.constant 0 : i32
    return %arg0, %c0_i32, %arg1, %c0_i32_0 : i32, i32, i32, i32
  }
}

</mosaic_0001>

<bundles_post_ra>
// kernel: tpu_custom_call.1
= control target key start
LH: loop header
LB: loop body
LE: loop exit
PB: predicated region body
PF: predicated region fallthrough
CT: control target
= control target key end

     0   :  { %10 = vsyncpa [#allocation3], 0  ;;  %s1243_s0 = inlined_call_operand.hbm [shape: bf16[2,32,32], index: 0, kind: input, shape index: {}]   ;;  %s1244_s1 = inlined_call_operand.hbm [shape: bf16[32,32], index: 1, kind: input, shape index: {}]   ;;  %s1245_s2 = inlined_call_operand.hbm [shape: bf16[32,32], index: 2, kind: input, shape index: {}]   ;;  %s1246_s3 = inlined_call_operand.vmem [shape: bf16[2,4,32,8], index: 3, kind: output, shape index: {0}]   ;;  %s1247_s4 = inlined_call_operand.vmem [shape: bf16[2,4,32,8], index: 4, kind: output, shape index: {1}]  }
   0x1   :  { %12 = vsyncpa [#allocation3 + $0x1], 0 }
   0x2   :  { %13 = vsyncpa [#allocation5], 0  ;;  %s1031_s15 = smov 0   ;;  %s1033_s16 = smov 0  }
   0x3   :  { %s1035_s17 = smov 0   ;;  %s1037_s18 = smov 0  }
   0x4   :  { %s1039_s19 = smov 0   ;;  %s1041_s20 = smov 0  }
   0x5 LB: > { %s688_s21 = sadd.s32 4294967295, %s997_s20   ;;  %p53_p0 = scmp.ne.s32.totalorder %s981_s16, %s977_s15  ;;  %s997_s20 = sphi %s1041_s20, %s19_s20   ;;  %s993_s19 = sphi %s1039_s19, %s1256_s19   ;;  %s989_s18 = sphi %s1037_s18, %s1255_s18   ;;  %s985_s17 = sphi %s1035_s17, %s1254_s17   ;;  %s981_s16 = sphi %s1033_s16, %s1253_s16   ;;  %s977_s15 = sphi %s1031_s15, %s1252_s15  }
   0x6   : > { %p1061_p1 = scmp.eq.s32.totalorder %s688_s21, 0  ;;  %p690_p2 = scmp.ge.s32.totalorder %s997_s20, 1 }
   0x7   : > { %p162_p3 = scmp.lt.s32.totalorder %s997_s20, 3  ;;  %s173_s26 = sshll.u32 %s1244_s1, 4  ;;  %s174_s26 = int_to_ptr.hbm [resolvable:$true] %s173_s26 }
   0x8   : > { %p1069_p4 = por %p1061_p1, %p53_p0  ;;  %s999_s28 = smov [#allocation4]  }
   0x9   : > { %p1076_p5 = pnand %p690_p2, %p162_p3  ;;  %s175_s29 = sshll.u32 %s999_s28, 4  ;;  %s176_s29 = int_to_ptr.vmem [resolvable:$true] %s175_s29 }
   0xa   : > { %s187_s6 = sshll.u32 %s1245_s2, 4  ;;  %s1000_s7 = smov 64   ;;  %s188_s6 = int_to_ptr.hbm [resolvable:$true] %s187_s6 }
   0xb   : > { %p782_p6 = pneg %p1076_p5  ;;  %s1001_s8 = smov 4  }
   0xc   : > { %s1002_s9 = smov [#allocation6]   ;;  %s31_s11 = sadd.s32 1, %s993_s19 }
   0xd   : > { %p783_p7 = pnand %p782_p6, %p1061_p1  ;;  %s189_s10 = sshll.u32 %s1002_s9, 4  ;;  %s190_s10 = int_to_ptr.vmem [resolvable:$true] %s189_s10 }
   0xe   : > { %s40_s12 = sadd.s32 1, %s985_s17  ;;  %p33_p8 = scmp.ge.s32.totalorder %s31_s11, 2 }
   0xf   : > { %785 = dma.hbm_to_vmem [thread:$0]  (!%p783_p7), %s174_s26, 256, %s176_s29, [#allocation5], %s1000_s7, %s1000_s7, %s1001_s8  }
  0x10   : > { %788 = dma.hbm_to_vmem [thread:$0]  (!%p783_p7), %s188_s6, 256, %s190_s10, [#allocation5], %s1000_s7, %s1000_s7, %s1001_s8  }
  0x11   : > { %p47_p9 = scmp.ne.s32.totalorder %s985_s17, %s981_s16  ;;  %p48_p10 = scmp.eq.s32.totalorder %s997_s20, 0 }
  0x12   : > { %p795_p11 = scmp.lt.s32.totalorder %s997_s20, 2  ;;  %s1258_s11 = smov (%p33_p8, %s31_s11), 0 }
  0x13   : > { %p1101_p12 = por %p48_p10, %p47_p9  ;;  %s203_s14 = sand.u32 1, %s985_s17  }
  0x14   : > { %s35_s15 = ssub.s32 %s993_s19, %s1258_s11  ;;  %s694_s21 = sshll.u32 %s203_s14, 4 }
  0x15   : > { %p38_p13 = scmp.eq.s32.totalorder %s35_s15, 0  ;;  %s759_s24 = sshll.u32 %s993_s19, 4 }
  0x16   : > { %s214_s29 = scalar_lea.hbm %s1243_s0, %s759_s24  ;;  %s207_s30 = scalar_lea.vmem [#allocation2], %s694_s21 }
  0x17   : > { %s1110_s25 = scalar_select %p38_p13, %s985_s17, %s40_s12  }
  0x18   : > { %s217_s5 = sshll.u32 %s207_s30, 4  ;;  %s215_s6 = sshll.u32 %s214_s29, 4  ;;  %s218_s5 = int_to_ptr.vmem [resolvable:$true] %s217_s5  ;;  %s216_s6 = int_to_ptr.hbm [resolvable:$true] %s215_s6 }
  0x19   : > { %p790_p0 = pnand %p795_p11, %p1101_p12  ;;  %s204_s9 = scalar_lea.sflag [#allocation3], %s203_s14 }
  0x1a   : > { %229 = sbr.rel (%p1076_p5) target bundleno = 343 (0x157), region = 32  ;;  %s231_s10 = sand.u32 (!%p1076_p5), 1, %s981_s16  }
  0x1b   : > { %792 = dma.hbm_to_vmem [thread:$0]  (!%p790_p0), %s216_s6, 256, %s218_s5, %s204_s9, %s1000_s7, %s1000_s7, %s1001_s8  }
  0x1c   : > { %s698_s12 = sshll.u32 (!%p1076_p5), %s231_s10, 4  ;;  %s232_s15 = scalar_lea.sflag (!%p1076_p5), [#allocation3], %s231_s10 }
  0x1d   : > { %s235_s21 = scalar_lea.vmem (!%p1076_p5), [#allocation2], %s698_s12 }
  0x1f   : > { %968 = dma.done.wait (%p1069_p4), %s232_s15, 256  }
  0x20   : > { %970 = vsyncadd (%p1069_p4), %s232_s15, 4294967040 }
  0x21   : > { %972 = dma.done.wait (%p1061_p1), [#allocation5], 512  }
  0x22   : > { %974 = vsyncadd (%p1061_p1), [#allocation5], 4294966784  ;;  %v765_v0 = vld [vmem:[#allocation4 + $0x8] sm:$0xff]  ;;  %v767_v1 = vld [vmem:[#allocation6 + $0x8] sm:$0xff]  ;;  %vm336_vm0 = vcmask 261120   ;;  %p286_p1 = scmp.lt.s32.totalorder %s989_s18, 1 }
  0x23   : > { %349 = vmatpush.bf16.msra.mxu0 %v765_v0  ;;  %768 = vmatpush.bf16.msra.mxu2 %v765_v0  ;;  %v764_v2 = vld [vmem:[#allocation4] sm:$0xff]  ;;  %v766_v3 = vld [vmem:[#allocation6] sm:$0xff]  ;;  %v763_v5 = vld [vmem:[%s235_s21 + $0x8] sm:$0xff]  ;;  %vm405_vm1 = vcmask 60416   ;;  %s1004_s24 = smov 120   ;;  %s1005_s26 = smov 112  }
  0x24   : > { %388 = vmatpush.bf16.msra.mxu1 %v767_v1  ;;  %770 = vmatpush.bf16.msra.mxu3 %v767_v1  ;;  %v762_v4 = vld [vmem:[%s235_s21] sm:$0xff]  ;;  %s1260_s18 = smov (!%p286_p1, %s989_s18), 1 }
  0x25   : > { %s760_s22 = sshll.u32 %s1260_s18, 6  ;;  %s1003_s18 = smov 104  }
  0x26   : > { %s1138_s7 = scalar_lea.vmem %s1246_s3, %s760_s22  ;;  %s1143_s14 = scalar_lea.vmem %s1247_s4, %s760_s22 }
  0x27   : > { %350 = vmatpush.bf16.msra.mxu0 %v764_v2  ;;  %769 = vmatpush.bf16.msra.mxu2 %v764_v2 }
  0x28   : > { %389 = vmatpush.bf16.msra.mxu1 %v766_v3  ;;  %771 = vmatpush.bf16.msra.mxu3 %v766_v3 }
  0x2a   : > { %721 = vmatmul.msk.bf16.vlgmr.msra.gmra.mxu0 %vm336_vm0, %v762_v4  ;;  %722 = vmatmul.msk.bf16.vlgmr.msra.gmra.mxu2 %vm336_vm0, %v763_v5 }
  0x2b   : > { %731 = vmatmul.msk.bf16.vlgmr.msra.gmra.mxu1 %vm336_vm0, %v762_v4  ;;  %732 = vmatmul.msk.bf16.vlgmr.msra.gmra.mxu3 %vm336_vm0, %v763_v5 }
  0xa7   : > { %v352_v6 = vpop.f32.mrf.mxu0 }
  0xa8   : > { %v362_v7 = vpack.c.bf16 %v352_v6, %v352_v6  ;;  %v391_v8 = vpop.f32.mrf.mxu1 }
  0xa9   : > { %v401_v9 = vpack.c.bf16 %v391_v8, %v391_v8 }
  0xaa   : > { %406 = vst.msk [vmem:[%s1138_s7] sm:$0xf] %vm405_vm1, %v362_v7  ;;  %490 = vrot.lane.b32.xlu1 %v362_v7, %s1003_s18  ;;  %418 = vrot.lane.b32.xlu0 %v362_v7, %s1004_s24 }
  0xab   : > { %410 = vst.msk [vmem:[%s1143_s14] sm:$0xf] %vm405_vm1, %v401_v9  ;;  %439 = vrot.lane.b32.xlu2 %v401_v9, %s1004_s24 }
  0xad   : > { %v357_v10 = vpop.f32.mrf.mxu2 }
  0xae   : > { %v364_v11 = vpack.c.bf16 %v357_v10, %v357_v10  ;;  %v396_v12 = vpop.f32.mrf.mxu3 }
  0xaf   : > { %v354_v13 = vpop.f32.mrf.mxu0  ;;  %v403_v14 = vpack.c.bf16 %v396_v12, %v396_v12 }
  0xb0   : > { %408 = vst.msk [vmem:[%s1138_s7 + $0x8] sm:$0xf] %vm405_vm1, %v364_v11  ;;  %v363_v15 = vpack.c.bf16 %v354_v13, %v354_v13  ;;  %v393_v16 = vpop.f32.mrf.mxu1 }
  0xb1   : > { %v402_v17 = vpack.c.bf16 %v393_v16, %v393_v16  ;;  %412 = vst.msk [vmem:[%s1143_s14 + $0x8] sm:$0xf] %vm405_vm1, %v403_v14 }
  0xb2   : > { %407 = vst.msk [vmem:[%s1138_s7 + $0x4] sm:$0xf] %vm405_vm1, %v363_v15  ;;  %422 = vrot.lane.b32.xlu1 %v364_v11, %s1004_s24  ;;  %473 = vrot.lane.b32.xlu0 %v401_v9, %s1005_s26 }
  0xb3   : > { %411 = vst.msk [vmem:[%s1143_s14 + $0x4] sm:$0xf] %vm405_vm1, %v402_v17  ;;  %456 = vrot.lane.b32.xlu2 %v362_v7, %s1005_s26 }
  0xb5   : > { %v359_v18 = vpop.f32.mrf.mxu2 }
  0xb6   : > { %v365_v19 = vpack.c.bf16 %v359_v18, %v359_v18  ;;  %v398_v20 = vpop.f32.mrf.mxu3 }
  0xb7   : > { %v404_v21 = vpack.c.bf16 %v398_v20, %v398_v20 }
  0xb8   : > { %409 = vst.msk [vmem:[%s1138_s7 + $0xc] sm:$0xf] %vm405_vm1, %v365_v19 }
  0xb9   : > { %413 = vst.msk [vmem:[%s1143_s14 + $0xc] sm:$0xf] %vm405_vm1, %v404_v21 }
  0xba   : > { %460 = vrot.lane.b32.xlu1 %v364_v11, %s1005_s26  ;;  %443 = vrot.lane.b32.xlu0 %v403_v14, %s1004_s24 }
  0xbb   : > { %507 = vrot.lane.b32.xlu2 %v401_v9, %s1003_s18 }
  0xc2   : > { %475 = vrot.lane.b32.xlu1 %v402_v17, %s1005_s26  ;;  %494 = vrot.lane.b32.xlu0 %v364_v11, %s1003_s18 }
  0xc3   : > { %477 = vrot.lane.b32.xlu2 %v403_v14, %s1005_s26 }
  0xca   : > { %424 = vrot.lane.b32.xlu1 %v365_v19, %s1004_s24  ;;  %420 = vrot.lane.b32.xlu0 %v363_v15, %s1004_s24 }
  0xcb   : > { %441 = vrot.lane.b32.xlu2 %v402_v17, %s1004_s24 }
  0xd2   : > { %445 = vrot.lane.b32.xlu1 %v404_v21, %s1004_s24  ;;  %458 = vrot.lane.b32.xlu0 %v363_v15, %s1005_s26 }
  0xd3   : > { %492 = vrot.lane.b32.xlu2 %v363_v15, %s1003_s18 }
  0xda   : > { %496 = vrot.lane.b32.xlu1 %v365_v19, %s1003_s18  ;;  %479 = vrot.lane.b32.xlu0 %v404_v21, %s1005_s26 }
  0xdb   : > { %462 = vrot.lane.b32.xlu2 %v365_v19, %s1005_s26 }
  0xe2   : > { %511 = vrot.lane.b32.xlu1 %v403_v14, %s1003_s18  ;;  %509 = vrot.lane.b32.xlu0 %v402_v17, %s1003_s18 }
  0xe3   : > { %513 = vrot.lane.b32.xlu2 %v404_v21, %s1003_s18 }
 0x105   : > { %v440_v22 = vpop.permute.xlu2 %439 }
 0x106   : > { %737 = vst.msk [vmem:[%s1143_s14 + $0x10] sm:$0xf] %vm405_vm1, %v440_v22 }
 0x10d   : > { %v457_v23 = vpop.permute.xlu2 %456 }
 0x10e   : > { %741 = vst.msk [vmem:[%s1138_s7 + $0x20] sm:$0xf] %vm405_vm1, %v457_v23 }
 0x115   : > { %v508_v24 = vpop.permute.xlu2 %507 }
 0x116   : > { %753 = vst.msk [vmem:[%s1143_s14 + $0x30] sm:$0xf] %vm405_vm1, %v508_v24 }
 0x11c   : > { %v491_v25 = vpop.permute.xlu1 %490  ;;  %v419_v26 = vpop.permute.xlu0 %418 }
 0x11d   : > { %749 = vst.msk [vmem:[%s1138_s7 + $0x30] sm:$0xf] %vm405_vm1, %v491_v25  ;;  %v478_v27 = vpop.permute.xlu2 %477 }
 0x11e   : > { %747 = vst.msk [vmem:[%s1143_s14 + $0x28] sm:$0xf] %vm405_vm1, %v478_v27 }
 0x11f   : > { %733 = vst.msk [vmem:[%s1138_s7 + $0x10] sm:$0xf] %vm405_vm1, %v419_v26 }
 0x124   : > { %v423_v28 = vpop.permute.xlu1 %422  ;;  %v474_v29 = vpop.permute.xlu0 %473 }
 0x125   : > { %735 = vst.msk [vmem:[%s1138_s7 + $0x18] sm:$0xf] %vm405_vm1, %v423_v28  ;;  %v442_v30 = vpop.permute.xlu2 %441 }
 0x126   : > { %738 = vst.msk [vmem:[%s1143_s14 + $0x14] sm:$0xf] %vm405_vm1, %v442_v30 }
 0x127   : > { %745 = vst.msk [vmem:[%s1143_s14 + $0x20] sm:$0xf] %vm405_vm1, %v474_v29 }
 0x12c   : > { %v461_v31 = vpop.permute.xlu1 %460  ;;  %v444_v32 = vpop.permute.xlu0 %443 }
 0x12d   : > { %743 = vst.msk [vmem:[%s1138_s7 + $0x28] sm:$0xf] %vm405_vm1, %v461_v31  ;;  %v493_v33 = vpop.permute.xlu2 %492 }
 0x12e   : > { %739 = vst.msk [vmem:[%s1143_s14 + $0x18] sm:$0xf] %vm405_vm1, %v444_v32 }
 0x12f   : > { %750 = vst.msk [vmem:[%s1138_s7 + $0x34] sm:$0xf] %vm405_vm1, %v493_v33 }
 0x134   : > { %v476_v34 = vpop.permute.xlu1 %475  ;;  %v495_v35 = vpop.permute.xlu0 %494 }
 0x135   : > { %746 = vst.msk [vmem:[%s1143_s14 + $0x24] sm:$0xf] %vm405_vm1, %v476_v34  ;;  %v463_v36 = vpop.permute.xlu2 %462 }
 0x136   : > { %751 = vst.msk [vmem:[%s1138_s7 + $0x38] sm:$0xf] %vm405_vm1, %v495_v35 }
 0x137   : > { %744 = vst.msk [vmem:[%s1138_s7 + $0x2c] sm:$0xf] %vm405_vm1, %v463_v36 }
 0x13c   : > { %v425_v37 = vpop.permute.xlu1 %424  ;;  %v421_v38 = vpop.permute.xlu0 %420 }
 0x13d   : > { %736 = vst.msk [vmem:[%s1138_s7 + $0x1c] sm:$0xf] %vm405_vm1, %v425_v37  ;;  %v514_v39 = vpop.permute.xlu2 %513 }
 0x13e   : > { %756 = vst.msk [vmem:[%s1143_s14 + $0x3c] sm:$0xf] %vm405_vm1, %v514_v39 }
 0x13f   : > { %734 = vst.msk [vmem:[%s1138_s7 + $0x14] sm:$0xf] %vm405_vm1, %v421_v38 }
 0x144   : > { %v446_v40 = vpop.permute.xlu1 %445  ;;  %v459_v41 = vpop.permute.xlu0 %458 }
 0x145   : > { %740 = vst.msk [vmem:[%s1143_s14 + $0x1c] sm:$0xf] %vm405_vm1, %v446_v40 }
 0x146   : > { %742 = vst.msk [vmem:[%s1138_s7 + $0x24] sm:$0xf] %vm405_vm1, %v459_v41 }
 0x14c   : > { %v497_v42 = vpop.permute.xlu1 %496  ;;  %v480_v43 = vpop.permute.xlu0 %479 }
 0x14d   : > { %752 = vst.msk [vmem:[%s1138_s7 + $0x3c] sm:$0xf] %vm405_vm1, %v497_v42 }
 0x14e   : > { %748 = vst.msk [vmem:[%s1143_s14 + $0x2c] sm:$0xf] %vm405_vm1, %v480_v43 }
 0x154   : > { %v512_v44 = vpop.permute.xlu1 %511  ;;  %v510_v45 = vpop.permute.xlu0 %509 }
 0x155   : > { %755 = vst.msk [vmem:[%s1143_s14 + $0x38] sm:$0xf] %vm405_vm1, %v512_v44 }
 0x156   : > { %754 = vst.msk [vmem:[%s1143_s14 + $0x34] sm:$0xf] %vm405_vm1, %v510_v45 }
 0x157 PF: > { %s19_s20 = sadd.s32 1, %s997_s20   ;;  %s1252_s15 = smov %s981_s16 }
 0x158   : > { %p16_p2 = scmp.ge.s32.totalorder %s19_s20, 4   ;;  %s1253_s16 = smov %s985_s17 }
 0x159   : > { %s1254_s17 = smov %s1110_s25  ;;  %s1255_s18 = smov %s993_s19 }
 0x15a   : > { %s1256_s19 = smov %s1258_s11  ;;  %18 = sbr.rel (!%p16_p2) target bundleno = 5 (0x5), region = 98 }
 0x15f   :  { %579 = vsyncpa [#allocation3], 1 }
 0x160   :  { %581 = vsyncpa [#allocation3 + $0x1], 1 }
 0x161   :  { %582 = vsyncpa [#allocation5], 1 }

</bundles_post_ra>
